<compile_context>
chip_gen: v6e
topology: v6e:2x2x1
jax: 0.10.0
libtpu: 0.0.40
codegen_flags: <defaults>
</compile_context>

<pallas_src>
import jax
import jax.numpy as jnp
from jax.experimental import pallas as pl
from jax.experimental.pallas import tpu as pltpu

LN_EPS = 1e-5


def _layernorm(h, gamma, beta):
    # h is f32; two-pass statistics for numerical robustness.
    mean = jnp.mean(h, axis=-1, keepdims=True)
    centered = h - mean
    var = jnp.mean(centered * centered, axis=-1, keepdims=True)
    inv = jax.lax.rsqrt(var + LN_EPS)
    return centered * inv * gamma + beta


def dqn_mlp_kernel(x_ref, w1t_ref, p1_ref, w2t_ref, p2_ref, w3t_ref, b3_ref,
                   out_ref):
    mm_dtype = w1t_ref.dtype            # f32 or bf16 (MXU operand dtype)
    x = x_ref[...].astype(mm_dtype)     # no-op cast when x streamed as bf16

    # layer1: Linear(n_obs, 64) -> LayerNorm(64) -> ReLU
    h = jnp.dot(x, w1t_ref[...],
                preferred_element_type=jnp.float32) + p1_ref[0:1, :]
    h = _layernorm(h, p1_ref[1:2, :], p1_ref[2:3, :])
    h = jnp.maximum(h, 0.0)

    # layer2: Linear(64, 128) -> LayerNorm(128) -> ReLU
    h = jnp.dot(h.astype(mm_dtype), w2t_ref[...],
                preferred_element_type=jnp.float32) + p2_ref[0:1, :]
    h = _layernorm(h, p2_ref[1:2, :], p2_ref[2:3, :])
    h = jnp.maximum(h, 0.0)

    # layer3: Linear(128, n_actions)
    out = jnp.dot(h.astype(mm_dtype), w3t_ref[...],
                  preferred_element_type=jnp.float32) + b3_ref[...]
    out_ref[...] = out.astype(out_ref.dtype)


def _choose_batch_tile(B, block_b):
    """Pick the batch tile.

    Small batches (low-latency inference): one block covering the batch.
    Large batches: biggest tile <= block_b, but guarantee >= 2 grid steps so
    a "parallel" batch axis can shard across v7x's two TensorCores.
    """
    assert block_b % 8 == 0, "batch tile must be a multiple of 8"
    if B <= 512:
        return min(B, block_b)
    half = ((pl.cdiv(B, 2) + 7) // 8) * 8      # split in two, 8-row aligned
    return min(block_b, half)


def dqn_forward(x, params, *, block_b=4096):
    """params = (w1t, p1, w2t, p2, w3t, b3) as produced by init_params."""
    w1t, p1, w2t, p2, w3t, b3 = params
    B, n_obs = x.shape
    n_actions = w3t.shape[1]

    # Stream x in the matmul operand dtype (halves the dominant HBM read for
    # bf16 weights); the cast happens once here, not per grid step in-kernel.
    if x.dtype != w1t.dtype:
        x = x.astype(w1t.dtype)

    tb = _choose_batch_tile(B, block_b)
    grid = (pl.cdiv(B, tb),)

    # Constant index_map -> weights/params stay resident in VMEM across steps.
    def resident(a):
        return pl.BlockSpec(a.shape, lambda i: (0,) * a.ndim)

    flops = 2 * B * (n_obs * 64 + 64 * 128 + 128 * n_actions)
    bytes_accessed = (x.size * x.dtype.itemsize
                      + sum(int(a.size) * a.dtype.itemsize for a in params)
                      + B * n_actions * 4)

    return pl.pallas_call(
        dqn_mlp_kernel,
        out_shape=jax.ShapeDtypeStruct((B, n_actions), jnp.float32),
        grid=grid,
        in_specs=[
            pl.BlockSpec((tb, n_obs), lambda i: (i, 0)),   # batch-tiled input
            resident(w1t), resident(p1),
            resident(w2t), resident(p2),
            resident(w3t), resident(b3),
        ],
        out_specs=pl.BlockSpec((tb, n_actions), lambda i: (i, 0)),
        compiler_params=pltpu.CompilerParams(
            dimension_semantics=(pltpu.PARALLEL,)),        # both TCs on v7x
        cost_estimate=pl.CostEstimate(
            flops=flops, transcendentals=2 * B,
            bytes_accessed=bytes_accessed),
    )(x, w1t, p1, w2t, p2, w3t, b3)


def init_params(key, n_observations, n_actions):
    ks = jax.random.split(key, 6)
    # mirrors PyTorch: weight.normal_(0, 0.3); bias.normal_(0.1) (mean=0.1, std=1)
    w1 = 0.3 * jax.random.normal(ks[0], (64, n_observations), jnp.float32)
    b1 = 0.1 + jax.random.normal(ks[1], (64,), jnp.float32)
    w2 = 0.3 * jax.random.normal(ks[2], (128, 64), jnp.float32)
    b2 = 0.1 + jax.random.normal(ks[3], (128,), jnp.float32)
    w3 = 0.3 * jax.random.normal(ks[4], (n_actions, 128), jnp.float32)
    b3 = 0.1 + jax.random.normal(ks[5], (n_actions,), jnp.float32)
    # LayerNorm affine params (PyTorch defaults)
    g1, be1 = jnp.ones((64,), jnp.float32), jnp.zeros((64,), jnp.float32)
    g2, be2 = jnp.ones((128,), jnp.float32), jnp.zeros((128,), jnp.float32)
    # pre-transpose weights (kernel computes x @ Wt; no in-kernel transpose)
    w1t, w2t, w3t = w1.T, w2.T, w3.T
    # pack per-layer vectors (bias, gamma, beta) into a single array each
    p1 = jnp.stack([b1, g1, be1])          # (3, 64)
    p2 = jnp.stack([b2, g2, be2])          # (3, 128)
    return (w1t, p1, w2t, p2, w3t, b3[None, :])


def cast_matmul_weights(params, dtype):
    """Cast only the MXU operands (weights); LN/bias params stay f32."""
    w1t, p1, w2t, p2, w3t, b3 = params
    return (w1t.astype(dtype), p1, w2t.astype(dtype), p2,
            w3t.astype(dtype), b3)


def reference_forward(x, params):
    """Pure-JAX reference using the same operand dtypes as the kernel."""
    w1t, p1, w2t, p2, w3t, b3 = params
    dt = w1t.dtype
    h = jnp.dot(x.astype(dt), w1t, preferred_element_type=jnp.float32) + p1[0:1]
    h = _layernorm(h, p1[1:2], p1[2:3])
    h = jnp.maximum(h, 0.0)
    h = jnp.dot(h.astype(dt), w2t, preferred_element_type=jnp.float32) + p2[0:1]
    h = _layernorm(h, p2[1:2], p2[2:3])
    h = jnp.maximum(h, 0.0)
    return jnp.dot(h.astype(dt), w3t, preferred_element_type=jnp.float32) + b3


if __name__ == "__main__":
    n_observations, n_actions = 16, 8
    key = jax.random.PRNGKey(0)
    kp, kx1, kx2, kx3 = jax.random.split(key, 4)
    params_f32 = init_params(kp, n_observations, n_actions)

    # 1) strict f32 path (matches original PyTorch module semantics), batch=2
    x1 = jax.random.normal(kx1, (2, n_observations), jnp.float32)
    out1 = jax.block_until_ready(dqn_forward(x1, params_f32))
    ref1 = reference_forward(x1, params_f32)
    assert out1.shape == (2, n_actions)
    assert jnp.allclose(out1, ref1, atol=1e-4, rtol=1e-4), "f32 mismatch"

    # 2) bf16 matmul-operand path + multi-step batch grid (resident weights)
    params_bf16 = cast_matmul_weights(params_f32, jnp.bfloat16)
    x2 = jax.random.normal(kx2, (16, n_observations), jnp.float32)
    out2 = jax.block_until_ready(dqn_forward(x2, params_bf16, block_b=8))
    ref2 = reference_forward(x2, params_bf16)
    assert out2.shape == (16, n_actions)
    assert jnp.allclose(out2, ref2, atol=1e-3, rtol=1e-3), "bf16 mismatch"

    # 3) large-batch path: auto tile selection -> >=2 grid steps (megacore)
    x3 = jax.random.normal(kx3, (1024, n_observations), jnp.float32)
    out3 = jax.block_until_ready(dqn_forward(x3, params_bf16))
    ref3 = reference_forward(x3, params_bf16)
    assert out3.shape == (1024, n_actions)
    assert jnp.allclose(out3, ref3, atol=1e-3, rtol=1e-3), "large-batch mismatch"

    print("KERNEL_OK")
</pallas_src>

<mosaic_0001>
module attributes {stable_mosaic.version = 11 : i64} {
  func.func @dqn_mlp_kernel(%arg0: i32, %arg1: memref<2x16xf32, #tpu.memory_space<vmem>>, %arg2: memref<16x64xf32, #tpu.memory_space<vmem>>, %arg3: memref<3x64xf32, #tpu.memory_space<vmem>>, %arg4: memref<64x128xf32, #tpu.memory_space<vmem>>, %arg5: memref<3x128xf32, #tpu.memory_space<vmem>>, %arg6: memref<128x8xf32, #tpu.memory_space<vmem>>, %arg7: memref<1x8xf32, #tpu.memory_space<vmem>>, %arg8: memref<2x8xf32, #tpu.memory_space<vmem>>) attributes {dimension_semantics = [#tpu.dimension_semantics<parallel>], iteration_bounds = array<i64: 1>, scalar_prefetch = 0 : i64, scratch_operands = 0 : i64, tpu.core_type = #tpu.core_type<tc>, window_params = [{transform_indices = @transform_0, window_bounds = array<i64: 2, 16>}, {pipeline_mode = #tpu.pipeline_mode<synchronous>, transform_indices = @transform_1, window_bounds = array<i64: 16, 64>}, {pipeline_mode = #tpu.pipeline_mode<synchronous>, transform_indices = @transform_2, window_bounds = array<i64: 3, 64>}, {pipeline_mode = #tpu.pipeline_mode<synchronous>, transform_indices = @transform_3, window_bounds = array<i64: 64, 128>}, {pipeline_mode = #tpu.pipeline_mode<synchronous>, transform_indices = @transform_4, window_bounds = array<i64: 3, 128>}, {pipeline_mode = #tpu.pipeline_mode<synchronous>, transform_indices = @transform_5, window_bounds = array<i64: 128, 8>}, {pipeline_mode = #tpu.pipeline_mode<synchronous>, transform_indices = @transform_6, window_bounds = array<i64: 1, 8>}, {transform_indices = @transform_7, window_bounds = array<i64: 2, 8>}]} {
    %c0 = arith.constant 0 : index
    %c0_0 = arith.constant 0 : index
    %0 = vector.load %arg1[%c0, %c0_0] : memref<2x16xf32, #tpu.memory_space<vmem>>, vector<2x16xf32>
    %c0_1 = arith.constant 0 : index
    %c0_2 = arith.constant 0 : index
    %1 = vector.load %arg2[%c0_1, %c0_2] : memref<16x64xf32, #tpu.memory_space<vmem>>, vector<16x64xf32>
    %cst = arith.constant dense<0.000000e+00> : vector<2x64xf32>
    %2 = tpu.matmul %0, %1, %cst {dimension_numbers = #tpu.dot_dimension_numbers<[1], [0], [0], [1], [0, 0, 1, 1], [], []>} : vector<2x16xf32>, vector<16x64xf32>, vector<2x64xf32> -> vector<2x64xf32>
    %c0_3 = arith.constant 0 : index
    %c0_4 = arith.constant 0 : index
    %3 = vector.load %arg3[%c0_3, %c0_4] : memref<3x64xf32, #tpu.memory_space<vmem>>, vector<1x64xf32>
    %4 = vector.broadcast %3 : vector<1x64xf32> to vector<2x64xf32>
    %5 = arith.addf %2, %4 : vector<2x64xf32>
    %c1 = arith.constant 1 : index
    %c0_5 = arith.constant 0 : index
    %6 = vector.load %arg3[%c1, %c0_5] : memref<3x64xf32, #tpu.memory_space<vmem>>, vector<1x64xf32>
    %c2 = arith.constant 2 : index
    %c0_6 = arith.constant 0 : index
    %7 = vector.load %arg3[%c2, %c0_6] : memref<3x64xf32, #tpu.memory_space<vmem>>, vector<1x64xf32>
    %cst_7 = arith.constant dense<0.000000e+00> : vector<2xf32>
    %8 = vector.multi_reduction <add>, %5, %cst_7 [1] : vector<2x64xf32> to vector<2xf32>
    %9 = vector.shape_cast %8 : vector<2xf32> to vector<2x1xf32>
    %cst_8 = arith.constant 6.400000e+01 : f32
    %10 = vector.broadcast %cst_8 : f32 to vector<2x1xf32>
    %11 = arith.divf %9, %10 : vector<2x1xf32>
    %12 = vector.broadcast %11 : vector<2x1xf32> to vector<2x64xf32>
    %13 = arith.subf %5, %12 : vector<2x64xf32>
    %14 = arith.mulf %13, %13 : vector<2x64xf32>
    %cst_9 = arith.constant dense<0.000000e+00> : vector<2xf32>
    %15 = vector.multi_reduction <add>, %14, %cst_9 [1] : vector<2x64xf32> to vector<2xf32>
    %16 = vector.shape_cast %15 : vector<2xf32> to vector<2x1xf32>
    %cst_10 = arith.constant 6.400000e+01 : f32
    %17 = vector.broadcast %cst_10 : f32 to vector<2x1xf32>
    %18 = arith.divf %16, %17 : vector<2x1xf32>
    %cst_11 = arith.constant 9.99999974E-6 : f32
    %19 = vector.broadcast %cst_11 : f32 to vector<2x1xf32>
    %20 = arith.addf %18, %19 : vector<2x1xf32>
    %21 = math.rsqrt %20 : vector<2x1xf32>
    %22 = vector.broadcast %21 : vector<2x1xf32> to vector<2x64xf32>
    %23 = arith.mulf %13, %22 : vector<2x64xf32>
    %24 = vector.broadcast %6 : vector<1x64xf32> to vector<2x64xf32>
    %25 = arith.mulf %23, %24 : vector<2x64xf32>
    %26 = vector.broadcast %7 : vector<1x64xf32> to vector<2x64xf32>
    %27 = arith.addf %25, %26 : vector<2x64xf32>
    %cst_12 = arith.constant 0.000000e+00 : f32
    %28 = vector.broadcast %cst_12 : f32 to vector<2x64xf32>
    %29 = arith.maximumf %27, %28 : vector<2x64xf32>
    %c0_13 = arith.constant 0 : index
    %c0_14 = arith.constant 0 : index
    %30 = vector.load %arg4[%c0_13, %c0_14] : memref<64x128xf32, #tpu.memory_space<vmem>>, vector<64x128xf32>
    %cst_15 = arith.constant dense<0.000000e+00> : vector<2x128xf32>
    %31 = tpu.matmul %29, %30, %cst_15 {dimension_numbers = #tpu.dot_dimension_numbers<[1], [0], [0], [1], [0, 0, 1, 1], [], []>} : vector<2x64xf32>, vector<64x128xf32>, vector<2x128xf32> -> vector<2x128xf32>
    %c0_16 = arith.constant 0 : index
    %c0_17 = arith.constant 0 : index
    %32 = vector.load %arg5[%c0_16, %c0_17] : memref<3x128xf32, #tpu.memory_space<vmem>>, vector<1x128xf32>
    %33 = vector.broadcast %32 : vector<1x128xf32> to vector<2x128xf32>
    %34 = arith.addf %31, %33 : vector<2x128xf32>
    %c1_18 = arith.constant 1 : index
    %c0_19 = arith.constant 0 : index
    %35 = vector.load %arg5[%c1_18, %c0_19] : memref<3x128xf32, #tpu.memory_space<vmem>>, vector<1x128xf32>
    %c2_20 = arith.constant 2 : index
    %c0_21 = arith.constant 0 : index
    %36 = vector.load %arg5[%c2_20, %c0_21] : memref<3x128xf32, #tpu.memory_space<vmem>>, vector<1x128xf32>
    %cst_22 = arith.constant dense<0.000000e+00> : vector<2xf32>
    %37 = vector.multi_reduction <add>, %34, %cst_22 [1] : vector<2x128xf32> to vector<2xf32>
    %38 = vector.shape_cast %37 : vector<2xf32> to vector<2x1xf32>
    %cst_23 = arith.constant 1.280000e+02 : f32
    %39 = vector.broadcast %cst_23 : f32 to vector<2x1xf32>
    %40 = arith.divf %38, %39 : vector<2x1xf32>
    %41 = vector.broadcast %40 : vector<2x1xf32> to vector<2x128xf32>
    %42 = arith.subf %34, %41 : vector<2x128xf32>
    %43 = arith.mulf %42, %42 : vector<2x128xf32>
    %cst_24 = arith.constant dense<0.000000e+00> : vector<2xf32>
    %44 = vector.multi_reduction <add>, %43, %cst_24 [1] : vector<2x128xf32> to vector<2xf32>
    %45 = vector.shape_cast %44 : vector<2xf32> to vector<2x1xf32>
    %cst_25 = arith.constant 1.280000e+02 : f32
    %46 = vector.broadcast %cst_25 : f32 to vector<2x1xf32>
    %47 = arith.divf %45, %46 : vector<2x1xf32>
    %cst_26 = arith.constant 9.99999974E-6 : f32
    %48 = vector.broadcast %cst_26 : f32 to vector<2x1xf32>
    %49 = arith.addf %47, %48 : vector<2x1xf32>
    %50 = math.rsqrt %49 : vector<2x1xf32>
    %51 = vector.broadcast %50 : vector<2x1xf32> to vector<2x128xf32>
    %52 = arith.mulf %42, %51 : vector<2x128xf32>
    %53 = vector.broadcast %35 : vector<1x128xf32> to vector<2x128xf32>
    %54 = arith.mulf %52, %53 : vector<2x128xf32>
    %55 = vector.broadcast %36 : vector<1x128xf32> to vector<2x128xf32>
    %56 = arith.addf %54, %55 : vector<2x128xf32>
    %cst_27 = arith.constant 0.000000e+00 : f32
    %57 = vector.broadcast %cst_27 : f32 to vector<2x128xf32>
    %58 = arith.maximumf %56, %57 : vector<2x128xf32>
    %c0_28 = arith.constant 0 : index
    %c0_29 = arith.constant 0 : index
    %59 = vector.load %arg6[%c0_28, %c0_29] : memref<128x8xf32, #tpu.memory_space<vmem>>, vector<128x8xf32>
    %cst_30 = arith.constant dense<0.000000e+00> : vector<2x8xf32>
    %60 = tpu.matmul %58, %59, %cst_30 {dimension_numbers = #tpu.dot_dimension_numbers<[1], [0], [0], [1], [0, 0, 1, 1], [], []>} : vector<2x128xf32>, vector<128x8xf32>, vector<2x8xf32> -> vector<2x8xf32>
    %c0_31 = arith.constant 0 : index
    %c0_32 = arith.constant 0 : index
    %61 = vector.load %arg7[%c0_31, %c0_32] : memref<1x8xf32, #tpu.memory_space<vmem>>, vector<1x8xf32>
    %62 = vector.broadcast %61 : vector<1x8xf32> to vector<2x8xf32>
    %63 = arith.addf %60, %62 : vector<2x8xf32>
    %c0_33 = arith.constant 0 : index
    %c0_34 = arith.constant 0 : index
    %64 = vector.load %arg8[%c0_33, %c0_34] : memref<2x8xf32, #tpu.memory_space<vmem>>, vector<2x8xf32>
    tpu.vector_store %arg8[%c0_33, %c0_34], %63 {strides = array<i32>} : memref<2x8xf32, #tpu.memory_space<vmem>>, vector<2x8xf32>,
    return
  }
  func.func @transform_0(%arg0: i32) -> (i32, i32) {
    %c0_i32 = arith.constant 0 : i32
    %c0_i32_0 = arith.constant 0 : i32
    return %arg0, %c0_i32 : i32, i32
  }
  func.func @transform_1(%arg0: i32) -> (i32, i32) {
    %c0_i32 = arith.constant 0 : i32
    %c0_i32_0 = arith.constant 0 : i32
    %c0_i32_1 = arith.constant 0 : i32
    return %c0_i32, %c0_i32_0 : i32, i32
  }
  func.func @transform_2(%arg0: i32) -> (i32, i32) {
    %c0_i32 = arith.constant 0 : i32
    %c0_i32_0 = arith.constant 0 : i32
    %c0_i32_1 = arith.constant 0 : i32
    return %c0_i32, %c0_i32_0 : i32, i32
  }
  func.func @transform_3(%arg0: i32) -> (i32, i32) {
    %c0_i32 = arith.constant 0 : i32
    %c0_i32_0 = arith.constant 0 : i32
    %c0_i32_1 = arith.constant 0 : i32
    return %c0_i32, %c0_i32_0 : i32, i32
  }
  func.func @transform_4(%arg0: i32) -> (i32, i32) {
    %c0_i32 = arith.constant 0 : i32
    %c0_i32_0 = arith.constant 0 : i32
    %c0_i32_1 = arith.constant 0 : i32
    return %c0_i32, %c0_i32_0 : i32, i32
  }
  func.func @transform_5(%arg0: i32) -> (i32, i32) {
    %c0_i32 = arith.constant 0 : i32
    %c0_i32_0 = arith.constant 0 : i32
    %c0_i32_1 = arith.constant 0 : i32
    return %c0_i32, %c0_i32_0 : i32, i32
  }
  func.func @transform_6(%arg0: i32) -> (i32, i32) {
    %c0_i32 = arith.constant 0 : i32
    %c0_i32_0 = arith.constant 0 : i32
    %c0_i32_1 = arith.constant 0 : i32
    return %c0_i32, %c0_i32_0 : i32, i32
  }
  func.func @transform_7(%arg0: i32) -> (i32, i32) {
    %c0_i32 = arith.constant 0 : i32
    %c0_i32_0 = arith.constant 0 : i32
    return %arg0, %c0_i32 : i32, i32
  }
}

</mosaic_0001>

<bundles_post_ra>
// kernel: tpu_custom_call.1
= control target key start
LH: loop header
LB: loop body
LE: loop exit
PB: predicated region body
PF: predicated region fallthrough
CT: control target
= control target key end

     0   :  { %v489_v1 = vmov 0.0   ;;  %vm490_vm0 = vmmov 0   ;;  %s668_s0 = inlined_call_operand.vmem [shape: f32[2,16], index: 0, kind: input, shape index: {}]   ;;  %s669_s1 = inlined_call_operand.vmem [shape: f32[16,64], index: 1, kind: input, shape index: {}]   ;;  %s670_s2 = inlined_call_operand.vmem [shape: f32[3,64], index: 2, kind: input, shape index: {}]   ;;  %s671_s3 = inlined_call_operand.vmem [shape: f32[64,128], index: 3, kind: input, shape index: {}]   ;;  %s672_s4 = inlined_call_operand.vmem [shape: f32[3,128], index: 4, kind: input, shape index: {}]   ;;  %s673_s5 = inlined_call_operand.vmem [shape: f32[128,8], index: 5, kind: input, shape index: {}]   ;;  %s674_s6 = inlined_call_operand.vmem [shape: f32[1,8], index: 6, kind: input, shape index: {}]   ;;  %s675_s7 = inlined_call_operand.hbm [shape: f32[2,8], index: 7, kind: output, shape index: {}]  }
   0x1   :  { %v29_v0 = vld [vmem:[%s669_s1 + $0x8] sm:$0xff]  ;;  %399 = vmatprep.subr.mxu1 %v489_v1  ;;  %v28_v2 = vld [vmem:[%s669_s1] sm:$0xff]  ;;  %403 = vmatprep.mubr.msk.f32.mxu1 %vm490_vm0, %v489_v1 }
   0x2   :  { %12 = vsyncpa [#allocation3], 0  ;;  %400 = vmatpush3.msra.mxu1 %v29_v0  ;;  %v27_v3 = vld [vmem:[%s668_s0] sm:$0x3]  ;;  %vm35_vm1 = vcmask 130048   ;;  %425 = vmatprep.subr.mxu0 %v489_v1  ;;  %vm111_vm2 = vcmask 517120  }
   0x3   :  { %401 = vmatprep.subr.mxu1 %v489_v1  ;;  %457 = vmatprep.mubr.msk.f32.mxu0 %vm490_vm0, %v489_v1  ;;  %v361_v4 = vld [vmem:[%s670_s2] ss:$0 sm:$0xff]  ;;  %v144_v14 = vld [vmem:[%s671_s3 + $0x38] sm:$0xff]  ;;  %v143_v15 = vld [vmem:[%s671_s3 + $0x30] sm:$0xff]  ;;  %vm150_vm3 = vcmask 523264   ;;  %vm226_vm4 = vcmask 1041408  }
   0x4   :  { %402 = vmatpush3.msra.mxu1 %v28_v2  ;;  %v142_v16 = vld [vmem:[%s671_s3 + $0x28] sm:$0xff]  ;;  %v141_v17 = vld [vmem:[%s671_s3 + $0x20] sm:$0xff]  ;;  %v140_v18 = vld [vmem:[%s671_s3 + $0x18] sm:$0xff]  ;;  %s491_s12 = smov [#allocation2]   ;;  %vm345_vm5 = vcmask 58368  }
   0x5   :  { %404 = vmatmul.mubr.msk.f32.vlgmr.msra.gmra.mxu1 %vm35_vm1, %v27_v3  ;;  %406 = vmatprep.subr.mxu1 %v489_v1  ;;  %v139_v19 = vld [vmem:[%s671_s3 + $0x10] sm:$0xff]  ;;  %v138_v20 = vld [vmem:[%s671_s3 + $0x8] sm:$0xff]  ;;  %v137_v21 = vld [vmem:[%s671_s3] sm:$0xff]  ;;  %s353_s13 = sshll.u32 %s491_s12, 4  ;;  %s354_s13 = int_to_ptr.vmem [resolvable:$true] %s353_s13 }
   0x6   :  { %422 = vmatprep.mubr.msk.f32.mxu1 %vm490_vm0, %v489_v1  ;;  %407 = vmatpush3.msra.mxu1 %v144_v14  ;;  %v363_v26 = vld [vmem:[%s670_s2 + $0x1] ss:$0 sm:$0xff]  ;;  %v364_v28 = vld [vmem:[%s670_s2 + $0x2] ss:$0 sm:$0xff]  ;;  %v365_v32 = vld [vmem:[%s672_s4] ss:$0 sm:$0xff]  ;;  %p472_p1 = scmp.lt.s32.totalorder %s354_s13, %s354_s13 }
   0x7   :  { %408 = vmatprep.subr.mxu1 %v489_v1  ;;  %v267_v37 = vld [vmem:[%s673_s5 + $0x78] sm:$0xff]  ;;  %v266_v38 = vld [vmem:[%s673_s5 + $0x70] sm:$0xff]  ;;  %v265_v39 = vld [vmem:[%s673_s5 + $0x68] sm:$0xff]  ;;  %s467_s14 = scalar_lea.vmem %s354_s13, 32 }
   0x8   :  { %409 = vmatpush3.msra.mxu1 %v143_v15  ;;  %426 = vmatpush3.msra.mxu0 %v267_v37  ;;  %v264_v45 = vld [vmem:[%s673_s5 + $0x60] sm:$0xff]  ;;  %v263_v46 = vld [vmem:[%s673_s5 + $0x58] sm:$0xff]  ;;  %v262_v47 = vld [vmem:[%s673_s5 + $0x50] sm:$0xff]  ;;  %p468_p0 = scmp.ne.s32.totalorder %s354_s13, %s467_s14  ;;  %p473_p2 = scmp.lt.s32.totalorder %s467_s14, %s467_s14 }
   0x9   :  { %410 = vmatprep.subr.mxu1 %v489_v1  ;;  %427 = vmatprep.subr.mxu0 %v489_v1  ;;  %v261_v48 = vld [vmem:[%s673_s5 + $0x48] sm:$0xff]  ;;  %v260_v49 = vld [vmem:[%s673_s5 + $0x40] sm:$0xff]  ;;  %v259_v50 = vld [vmem:[%s673_s5 + $0x38] sm:$0xff] }
   0xa   :  { %411 = vmatpush3.msra.mxu1 %v142_v16  ;;  %428 = vmatpush3.msra.mxu0 %v266_v38  ;;  %v258_v51 = vld [vmem:[%s673_s5 + $0x30] sm:$0xff]  ;;  %v257_v52 = vld [vmem:[%s673_s5 + $0x28] sm:$0xff]  ;;  %v256_v53 = vld [vmem:[%s673_s5 + $0x20] sm:$0xff]  ;;  %p474_p3 = por %p473_p2, %p472_p1 }
   0xb   :  { %412 = vmatprep.subr.mxu1 %v489_v1  ;;  %429 = vmatprep.subr.mxu0 %v489_v1  ;;  %v255_v54 = vld [vmem:[%s673_s5 + $0x18] sm:$0xff]  ;;  %v254_v55 = vld [vmem:[%s673_s5 + $0x10] sm:$0xff]  ;;  %v253_v56 = vld [vmem:[%s673_s5 + $0x8] sm:$0xff] }
   0xc   :  { %413 = vmatpush3.msra.mxu1 %v141_v17  ;;  %430 = vmatpush3.msra.mxu0 %v265_v39  ;;  %v252_v57 = vld [vmem:[%s673_s5] sm:$0xff]  ;;  %p475_p4 = pnand %p474_p3, %p468_p0 }
   0xd   :  { %414 = vmatprep.subr.mxu1 %v489_v1  ;;  %431 = vmatprep.subr.mxu0 %v489_v1  ;;  %v367_v62 = vld [vmem:[%s672_s4 + $0x1] ss:$0 sm:$0xff]  ;;  %v368_v0 = vld [vmem:[%s672_s4 + $0x2] ss:$0 sm:$0xff] }
   0xe   :  { %415 = vmatpush3.msra.mxu1 %v140_v18  ;;  %432 = vmatpush3.msra.mxu0 %v264_v45 }
   0xf   :  { %416 = vmatprep.subr.mxu1 %v489_v1  ;;  %433 = vmatprep.subr.mxu0 %v489_v1 }
  0x10   :  { %417 = vmatpush3.msra.mxu1 %v139_v19  ;;  %434 = vmatpush3.msra.mxu0 %v263_v46 }
  0x11   :  { %418 = vmatprep.subr.mxu1 %v489_v1  ;;  %435 = vmatprep.subr.mxu0 %v489_v1 }
  0x12   :  { %419 = vmatpush3.msra.mxu1 %v138_v20  ;;  %436 = vmatpush3.msra.mxu0 %v262_v47 }
  0x13   :  { %420 = vmatprep.subr.mxu1 %v489_v1  ;;  %437 = vmatprep.subr.mxu0 %v489_v1 }
  0x14   :  { %421 = vmatpush3.msra.mxu1 %v137_v21  ;;  %438 = vmatpush3.msra.mxu0 %v261_v48 }
  0x15   :  { %439 = vmatprep.subr.mxu0 %v489_v1 }
  0x16   :  { %440 = vmatpush3.msra.mxu0 %v260_v49 }
  0x17   :  { %441 = vmatprep.subr.mxu0 %v489_v1 }
  0x18   :  { %442 = vmatpush3.msra.mxu0 %v259_v50 }
  0x19   :  { %443 = vmatprep.subr.mxu0 %v489_v1 }
  0x1a   :  { %444 = vmatpush3.msra.mxu0 %v258_v51 }
  0x1b   :  { %445 = vmatprep.subr.mxu0 %v489_v1 }
  0x1c   :  { %446 = vmatpush3.msra.mxu0 %v257_v52 }
  0x1d   :  { %447 = vmatprep.subr.mxu0 %v489_v1 }
  0x1e   :  { %448 = vmatpush3.msra.mxu0 %v256_v53 }
  0x1f   :  { %449 = vmatprep.subr.mxu0 %v489_v1 }
  0x20   :  { %450 = vmatpush3.msra.mxu0 %v255_v54 }
  0x21   :  { %451 = vmatprep.subr.mxu0 %v489_v1 }
  0x22   :  { %452 = vmatpush3.msra.mxu0 %v254_v55 }
  0x23   :  { %453 = vmatprep.subr.mxu0 %v489_v1 }
  0x24   :  { %454 = vmatpush3.msra.mxu0 %v253_v56 }
  0x25   :  { %455 = vmatprep.subr.mxu0 %v489_v1  ;;  %v369_v1 = vld [vmem:[%s674_s6] ss:$0 sm:$0xff] }
  0x26   :  { %456 = vmatpush3.msra.mxu0 %v252_v57 }
  0xc5   :  { %v105_v5 = vpop.f32.mrf.mxu1 }
  0xc6   :  { %v106_v6 = vadd.f32 %v361_v4, %v105_v5 }
  0xc7   :  { %v405_v7 = vpop.f32.mrf.mxu1 }
  0xc8   :  { %v112_v8 = vsel %vm111_vm2, %v106_v6, 0.0 }
  0xc9   :  { %113 = vadd.xlane.f32.xlu0 %v112_v8 }
 0x152   :  { %v114_v9 = vpop.xlane.xlu0 %113 }
 0x153   :  { %v116_v10 = vmul.f32 0.015625, %v114_v9 }
 0x155   :  { %v117_v11 = vsub.f32 %v106_v6, %v116_v10 }
 0x157   :  { %v118_v12 = vmul.f32 %v117_v11, %v117_v11 }
 0x159   :  { %v119_v13 = vsel %vm111_vm2, %v118_v12, 0.0 }
 0x15a   :  { %120 = vadd.xlane.f32.xlu0 %v119_v13 }
 0x1e3   :  { %v121_v22 = vpop.xlane.xlu0 %120 }
 0x1e4   :  { %v122_v23 = vmul.f32 0.015625, %v121_v22 }
 0x1e6   :  { %v123_v24 = vadd.f32 1e-05, %v122_v23 }
 0x1e8   :  { %463 = vrsqrt.f32 %v123_v24 }
 0x1f5   :  { %v464_v25 = vpop.eup %463 }
 0x1f6   :  { %v125_v27 = vmul.f32 %v464_v25, %v117_v11 }
 0x1f8   :  { %v130_v29 = vmul.f32 %v363_v26, %v125_v27 }
 0x1fa   :  { %v135_v30 = vadd.f32 %v364_v28, %v130_v29 }
 0x1fc   :  { %v136_v31 = vmax.f32 %v135_v30, 0.0 }
 0x1fe   :  { %423 = vmatmul.mubr.msk.f32.vlgmr.msra.gmra.mxu1 %vm150_vm3, %v136_v31 }
 0x2be   :  { %v220_v33 = vpop.f32.mrf.mxu1 }
 0x2bf   :  { %v221_v34 = vadd.f32 %v365_v32, %v220_v33 }
 0x2c0   :  { %v424_v35 = vpop.f32.mrf.mxu1 }
 0x2c1   :  { %v227_v36 = vsel %vm226_vm4, %v221_v34, 0.0 }
 0x2c2   :  { %228 = vadd.xlane.f32.xlu1 %v227_v36 }
 0x34b   :  { %v229_v40 = vpop.xlane.xlu1 %228 }
 0x34c   :  { %v231_v41 = vmul.f32 0.0078125, %v229_v40 }
 0x34e   :  { %v232_v42 = vsub.f32 %v221_v34, %v231_v41 }
 0x350   :  { %v233_v43 = vmul.f32 %v232_v42, %v232_v42 }
 0x352   :  { %v234_v44 = vsel %vm226_vm4, %v233_v43, 0.0 }
 0x353   :  { %235 = vadd.xlane.f32.xlu1 %v234_v44 }
 0x3dc   :  { %v236_v58 = vpop.xlane.xlu1 %235 }
 0x3dd   :  { %v237_v59 = vmul.f32 0.0078125, %v236_v58 }
 0x3df   :  { %v238_v60 = vadd.f32 1e-05, %v237_v59 }
 0x3e1   :  { %465 = vrsqrt.f32 %v238_v60 }
 0x3ee   :  { %v466_v61 = vpop.eup %465 }
 0x3ef   :  { %v240_v63 = vmul.f32 %v466_v61, %v232_v42 }
 0x3f1   :  { %v245_v2 = vmul.f32 %v367_v62, %v240_v63 }
 0x3f3   :  { %v250_v3 = vadd.f32 %v368_v0, %v245_v2 }
 0x3f5   :  { %v251_v4 = vmax.f32 %v250_v3, 0.0 }
 0x3f7   :  { %458 = vmatmul.mubr.f32.vlgmr.msra.gmra.mxu0 %v251_v4 }
 0x4b7   :  { %v341_v5 = vpop.f32.mrf.mxu0 }
 0x4b8   :  { %v342_v6 = vadd.f32 %v369_v1, %v341_v5 }
 0x4b9   :  { %v459_v7 = vpop.f32.mrf.mxu0 }
 0x4ba   :  { %346 = vst.msk [vmem:[#allocation2] sm:$0x3] %vm345_vm5, %v342_v6 }
 0x4bb   :  { %478 = shalt.err (!%p475_p4)
}
 0x4bc   :  { %356 = dma.vmem_to_hbm [thread:$0]  %s354_s13, 32, %s675_s7, [#allocation3]  }
 0x4bd   :  { %487 = dma.done.wait [#allocation3], 32  }
 0x4be   :  { %488 = vsyncadd [#allocation3], 4294967264 }
 0x4bf   :  { %360 = vsyncpa [#allocation3], 1 }

</bundles_post_ra>
